<compile_context>
chip_gen: v7x
topology: tpu7x:2x2x1
jax: 0.10.0
libtpu: 0.0.40
codegen_flags: <defaults>
</compile_context>

<pallas_src>
import functools

import jax
import jax.numpy as jnp
from jax import lax
from jax.experimental import pallas as pl
from jax.experimental.pallas import tpu as pltpu

EPS_NORMALIZE = 1e-12   # F.normalize default eps
MARGIN = 0.4            # m default in the module
NEG_INF = -1e30         # finite "minus infinity" (avoids inf-inf NaNs in LSE)
# s = 30.0 is defined in __init__ but unused in the reference forward.


def _cosface_kernel(x_ref, w_ref, b_ref, labels_ref, rowloss_ref,
                    xn_scr, m_scr, l_scr, zlab_scr,
                    *, n_actual, tm, tn):
    i = pl.program_id(0)          # N-tile index ("parallel")
    j = pl.program_id(1)          # C-tile index ("arbitrary", reduction)
    n_c_tiles = pl.num_programs(1)

    @pl.when(j == 0)
    def _init():
        # L2-normalize this N tile once, cache as bf16 for the MXU.
        x = x_ref[...].astype(jnp.float32)                      # (tm, D)
        sumsq = jnp.sum(x * x, axis=-1, keepdims=True)
        # F.normalize: x / max(||x||, eps) == x * rsqrt(max(sumsq, eps^2))
        inv_norm = lax.rsqrt(jnp.maximum(sumsq, EPS_NORMALIZE * EPS_NORMALIZE))
        xn_scr[...] = (x * inv_norm).astype(jnp.bfloat16)
        m_scr[...] = jnp.full_like(m_scr, NEG_INF)
        l_scr[...] = jnp.zeros_like(l_scr)
        zlab_scr[...] = jnp.zeros_like(zlab_scr)

    # (tm, D) @ (D, tn): bf16 inputs (both pre-cast), f32 accumulation on MXU.
    # Padded class columns have W == 0 and bias == NEG_INF -> logits == NEG_INF
    # with no extra masking work here.
    logits = jnp.dot(xn_scr[...], w_ref[...],
                     preferred_element_type=jnp.float32) + b_ref[...]  # (tm, tn)

    # Label mask from a (1, tn) lane iota vs the (tm, 1) tile-local labels;
    # padded rows carry label -1 and never match.
    local_col = lax.broadcasted_iota(jnp.int32, (1, tn), 1)             # (1, tn)
    local_lab = labels_ref[...] - j * tn                                # (tm, 1)
    is_label = local_lab == local_col                                   # (tm, tn)

    # Additive margin on the target column only.
    logits = jnp.where(is_label, logits - MARGIN, logits)

    # Online logsumexp across C tiles.
    row_max = jnp.max(logits, axis=-1, keepdims=True)                   # (tm, 1)
    m_new = jnp.maximum(m_scr[...], row_max)
    alpha = jnp.exp(m_scr[...] - m_new)
    p = jnp.exp(logits - m_new)
    l_scr[...] = alpha * l_scr[...] + jnp.sum(p, axis=-1, keepdims=True)
    m_scr[...] = m_new
    # Gather the (post-margin) target logit for rows whose label is in tile j.
    zlab_scr[...] += jnp.sum(jnp.where(is_label, logits, 0.0),
                             axis=-1, keepdims=True)

    @pl.when(j == n_c_tiles - 1)
    def _finalize():
        # per-row CE loss: logsumexp - (z_label - m); padded rows -> 0.
        row = lax.broadcasted_iota(jnp.int32, (tm, 1), 0) + i * tm
        row_loss = m_scr[...] + jnp.log(l_scr[...]) - zlab_scr[...]
        rowloss_ref[...] = jnp.where(row < n_actual, row_loss, 0.0)


def _round_up(v, m):
    return ((v + m - 1) // m) * m


def _cdiv(a, b):
    return (a + b - 1) // b


def _vmem_limit_bytes():
    """Per-chip VMEM-aware limit: ~56 MiB on v7x (64 MiB phys), ~100 MiB on
    v5e/v6e (128 MiB phys)."""
    try:
        cap = int(pltpu.get_tpu_info().vmem_capacity_bytes)
    except Exception:
        cap = 64 * 1024 * 1024          # conservative (v7x-sized) fallback
    return max(32 * 1024 * 1024, min(cap - 8 * 1024 * 1024, 100 * 1024 * 1024))


def _choose_tiles(n, d, c, budget):
    """Pick (tm, tn): lane-dense C tiles, big balanced N tiles, all within the
    VMEM budget (double-buffered bf16 W + f32 x + (tm,tn) f32 temporaries)."""
    # C tile: largest multiple of 128 (<= 2048) whose double-buffered bf16
    # stream stays within ~40% of the budget.
    tn = min(_round_up(c, 128), 2048)
    while tn > 128 and 2 * d * tn * 2 > 0.4 * budget:
        tn -= 128
    tn = max(tn, 128)

    def working(tm_):
        return (2 * tm_ * d * 4        # x double buffer (f32)
                + tm_ * d * 2          # cached normalized x (bf16 scratch)
                + 2 * d * tn * 2       # W double buffer (bf16)
                + 3 * tm_ * tn * 4     # (tm, tn) f32 temporaries
                + 2 * tn * 4           # bias double buffer
                + 16 * tm_ * 4)        # labels / row-loss / (tm,1) scratch

    # Largest tm (power-of-two multiple of 8, <= 1024) that fits the budget:
    # every extra N tile replays all of W from HBM, so bigger is better.
    tm_max = 1024
    while tm_max > 8 and working(tm_max) > budget:
        tm_max //= 2
    tm_max = max(tm_max, 8)

    # Balance N tiles (avoid a nearly-empty trailing tile) and keep >= 2 tiles
    # when the batch allows it so v7x megacore has a parallel axis to shard.
    n_tiles = _cdiv(n, tm_max)
    if n_tiles == 1 and n > 8:
        n_tiles = 2
    tm = min(_round_up(_cdiv(n, n_tiles), 8), tm_max)
    return tm, tn


def cosface_loss(x, weight, bias, labels, *, tm=None, tn=None):
    """x: (N, D) f32, weight: (C, D) f32 (nn.Linear layout), bias: (C,) f32,
    labels: (N,) int.  Returns the scalar mean CosFace cross-entropy loss."""
    n, d = x.shape
    c = weight.shape[0]

    vmem_limit = _vmem_limit_bytes()
    auto_tm, auto_tn = _choose_tiles(n, d, c, budget=int(0.6 * vmem_limit))
    tm = auto_tm if tm is None else tm
    tn = auto_tn if tn is None else tn

    n_pad = _round_up(n, tm)
    c_pad = _round_up(c, tn)

    x_p = jnp.pad(x, ((0, n_pad - n), (0, 0)))
    # W: one-time bf16 cast + transpose to (D, C) in the wrapper (weights), so
    # the kernel streams half the bytes and uses the natural (M,K)x(K,N) form.
    w_p = jnp.pad(weight.astype(jnp.bfloat16).T, ((0, 0), (0, c_pad - c)))
    # Pad bias with NEG_INF: padded columns arrive at NEG_INF for free
    # (their W columns are zero), so no column masking in the hot loop.
    b_p = jnp.pad(bias.astype(jnp.float32), (0, c_pad - c),
                  constant_values=NEG_INF).reshape(1, c_pad)
    lab_p = jnp.pad(labels.astype(jnp.int32), (0, n_pad - n),
                    constant_values=-1).reshape(n_pad, 1)

    grid = (n_pad // tm, c_pad // tn)
    n_tiles_n = grid[0]

    kernel = functools.partial(_cosface_kernel, n_actual=n, tm=tm, tn=tn)

    row_losses = pl.pallas_call(
        kernel,
        out_shape=jax.ShapeDtypeStruct((n_pad, 1), jnp.float32),
        grid_spec=pltpu.PrefetchScalarGridSpec(
            num_scalar_prefetch=0,
            grid=grid,
            in_specs=[
                pl.BlockSpec((tm, d), lambda i, j: (i, 0)),    # x tile (f32)
                pl.BlockSpec((d, tn), lambda i, j: (0, j)),    # W tile (D, C) bf16
                pl.BlockSpec((1, tn), lambda i, j: (0, j)),    # bias tile (f32)
                pl.BlockSpec((tm, 1), lambda i, j: (i, 0)),    # labels tile (i32)
            ],
            out_specs=pl.BlockSpec((tm, 1), lambda i, j: (i, 0)),
            scratch_shapes=[
                pltpu.VMEM((tm, d), jnp.bfloat16),   # cached normalized x
                pltpu.VMEM((tm, 1), jnp.float32),    # running max   (m_i)
                pltpu.VMEM((tm, 1), jnp.float32),    # running sum   (l_i)
                pltpu.VMEM((tm, 1), jnp.float32),    # target logit  (z_label)
            ],
        ),
        compiler_params=pltpu.CompilerParams(
            dimension_semantics=("parallel", "arbitrary"),
            vmem_limit_bytes=vmem_limit,
        ),
        cost_estimate=pl.CostEstimate(
            flops=2 * n_pad * d * c_pad,
            transcendentals=n_pad * c_pad,
            # W (bf16) + bias are re-streamed once per N tile.
            bytes_accessed=int(n_tiles_n * c_pad * d * 2
                               + n_tiles_n * c_pad * 4
                               + n_pad * d * 4
                               + n_pad * 4 * 2),
        ),
    )(x_p, w_p, b_p, lab_p)

    return jnp.sum(row_losses) / n


if __name__ == "__main__":
    key = jax.random.PRNGKey(0)
    N, D, C = 12, 32, 200          # batch, in_features, out_features (small)
    kx, kw, kb, kl = jax.random.split(key, 4)

    x = jax.random.normal(kx, (N, D), dtype=jnp.float32)
    # deterministic nn.Linear-style init: U(-1/sqrt(in), 1/sqrt(in))
    bound = 1.0 / (D ** 0.5)
    weight = jax.random.uniform(kw, (C, D), minval=-bound, maxval=bound,
                                dtype=jnp.float32)
    bias = jax.random.uniform(kb, (C,), minval=-bound, maxval=bound,
                              dtype=jnp.float32)
    labels = jax.random.randint(kl, (N,), 0, C, dtype=jnp.int32)

    # small explicit tiles so both grid axes (N padding + multi-tile online
    # logsumexp over C) are exercised even at this toy shape.
    loss = cosface_loss(x, weight, bias, labels, tm=8, tn=128)
    jax.block_until_ready(loss)

    # pure-JAX f32 reference for correctness (kernel uses bf16 MXU inputs with
    # f32 accumulation -> tiny numeric deviation, hence the loose tolerance)
    xn = x / jnp.maximum(jnp.linalg.norm(x, axis=1, keepdims=True), EPS_NORMALIZE)
    wf_ref = xn @ weight.T + bias
    onehot = jax.nn.one_hot(labels, C, dtype=jnp.float32)
    logits_ref = wf_ref - MARGIN * onehot
    ref = jnp.mean(-jnp.sum(onehot * jax.nn.log_softmax(logits_ref, axis=1), axis=1))
    assert jnp.allclose(loss, ref, atol=1e-2, rtol=1e-2), (float(loss), float(ref))

    # also exercise the auto tile chooser once
    loss_auto = cosface_loss(x, weight, bias, labels)
    jax.block_until_ready(loss_auto)
    assert jnp.allclose(loss_auto, ref, atol=1e-2, rtol=1e-2), (float(loss_auto), float(ref))

    print("KERNEL_OK")
</pallas_src>

<mosaic_0001>
module attributes {stable_mosaic.version = 11 : i64} {
  func.func @_cosface_kernel(%arg0: i32, %arg1: i32, %arg2: memref<8x32xf32, #tpu.memory_space<vmem>>, %arg3: memref<32x128xbf16, #tpu.memory_space<vmem>>, %arg4: memref<1x128xf32, #tpu.memory_space<vmem>>, %arg5: memref<8x1xi32, #tpu.memory_space<vmem>>, %arg6: memref<8x1xf32, #tpu.memory_space<vmem>>, %arg7: memref<8x32xbf16, #tpu.memory_space<vmem>>, %arg8: memref<8x1xf32, #tpu.memory_space<vmem>>, %arg9: memref<8x1xf32, #tpu.memory_space<vmem>>, %arg10: memref<8x1xf32, #tpu.memory_space<vmem>>) attributes {dimension_semantics = [#tpu.dimension_semantics<parallel>, #tpu.dimension_semantics<arbitrary>], iteration_bounds = array<i64: 2, 2>, scalar_prefetch = 0 : i64, scratch_operands = 4 : i64, tpu.core_type = #tpu.core_type<tc>, window_params = [{transform_indices = @transform_0, window_bounds = array<i64: 8, 32>}, {transform_indices = @transform_1, window_bounds = array<i64: 32, 128>}, {transform_indices = @transform_2, window_bounds = array<i64: 1, 128>}, {transform_indices = @transform_3, window_bounds = array<i64: 8, 1>}, {transform_indices = @transform_4, window_bounds = array<i64: 8, 1>}]} {
    %c0_i32 = arith.constant 0 : i32
    %0 = arith.cmpi eq, %arg1, %c0_i32 : i32
    %1 = arith.extui %0 : i1 to i32
    %c0_i32_0 = arith.constant 0 : i32
    %2 = arith.cmpi ne, %1, %c0_i32_0 : i32
    scf.if %2 {
      %c0_28 = arith.constant 0 : index
      %c0_29 = arith.constant 0 : index
      %47 = vector.load %arg2[%c0_28, %c0_29] : memref<8x32xf32, #tpu.memory_space<vmem>>, vector<8x32xf32>
      %48 = arith.mulf %47, %47 : vector<8x32xf32>
      %cst_30 = arith.constant dense<0.000000e+00> : vector<8xf32>
      %49 = vector.multi_reduction <add>, %48, %cst_30 [1] : vector<8x32xf32> to vector<8xf32>
      %50 = vector.shape_cast %49 : vector<8xf32> to vector<8x1xf32>
      %cst_31 = arith.constant 1.000000e-24 : f32
      %51 = vector.broadcast %cst_31 : f32 to vector<8x1xf32>
      %52 = arith.maximumf %50, %51 : vector<8x1xf32>
      %53 = math.rsqrt %52 : vector<8x1xf32>
      %54 = vector.broadcast %53 : vector<8x1xf32> to vector<8x32xf32>
      %55 = arith.mulf %47, %54 : vector<8x32xf32>
      %56 = arith.truncf %55 : vector<8x32xf32> to vector<8x32xbf16>
      %c0_32 = arith.constant 0 : index
      %c0_33 = arith.constant 0 : index
      %57 = vector.load %arg7[%c0_32, %c0_33] : memref<8x32xbf16, #tpu.memory_space<vmem>>, vector<8x32xbf16>
      tpu.vector_store %arg7[%c0_32, %c0_33], %56 {strides = array<i32>} : memref<8x32xbf16, #tpu.memory_space<vmem>>, vector<8x32xbf16>,
      %cst_34 = arith.constant -1.000000e+30 : f32
      %58 = vector.broadcast %cst_34 : f32 to vector<8x1xf32>
      %c0_35 = arith.constant 0 : index
      %c0_36 = arith.constant 0 : index
      %59 = vector.load %arg8[%c0_35, %c0_36] : memref<8x1xf32, #tpu.memory_space<vmem>>, vector<8x1xf32>
      tpu.vector_store %arg8[%c0_35, %c0_36], %58 {strides = array<i32>} : memref<8x1xf32, #tpu.memory_space<vmem>>, vector<8x1xf32>,
      %cst_37 = arith.constant 0.000000e+00 : f32
      %60 = vector.broadcast %cst_37 : f32 to vector<8x1xf32>
      %c0_38 = arith.constant 0 : index
      %c0_39 = arith.constant 0 : index
      %61 = vector.load %arg9[%c0_38, %c0_39] : memref<8x1xf32, #tpu.memory_space<vmem>>, vector<8x1xf32>
      tpu.vector_store %arg9[%c0_38, %c0_39], %60 {strides = array<i32>} : memref<8x1xf32, #tpu.memory_space<vmem>>, vector<8x1xf32>,
      %cst_40 = arith.constant 0.000000e+00 : f32
      %62 = vector.broadcast %cst_40 : f32 to vector<8x1xf32>
      %c0_41 = arith.constant 0 : index
      %c0_42 = arith.constant 0 : index
      %63 = vector.load %arg10[%c0_41, %c0_42] : memref<8x1xf32, #tpu.memory_space<vmem>>, vector<8x1xf32>
      tpu.vector_store %arg10[%c0_41, %c0_42], %62 {strides = array<i32>} : memref<8x1xf32, #tpu.memory_space<vmem>>, vector<8x1xf32>,
    } else {
    }
    %c0 = arith.constant 0 : index
    %c0_1 = arith.constant 0 : index
    %3 = vector.load %arg7[%c0, %c0_1] : memref<8x32xbf16, #tpu.memory_space<vmem>>, vector<8x32xbf16>
    %c0_2 = arith.constant 0 : index
    %c0_3 = arith.constant 0 : index
    %4 = vector.load %arg3[%c0_2, %c0_3] : memref<32x128xbf16, #tpu.memory_space<vmem>>, vector<32x128xbf16>
    %cst = arith.constant dense<0.000000e+00> : vector<8x128xf32>
    %5 = tpu.matmul %3, %4, %cst {dimension_numbers = #tpu.dot_dimension_numbers<[1], [0], [0], [1], [0, 0, 1, 1], [], []>} : vector<8x32xbf16>, vector<32x128xbf16>, vector<8x128xf32> -> vector<8x128xf32>
    %c0_4 = arith.constant 0 : index
    %c0_5 = arith.constant 0 : index
    %6 = vector.load %arg4[%c0_4, %c0_5] : memref<1x128xf32, #tpu.memory_space<vmem>>, vector<1x128xf32>
    %7 = vector.broadcast %6 : vector<1x128xf32> to vector<8x128xf32>
    %8 = arith.addf %5, %7 : vector<8x128xf32>
    %9 = tpu.iota {dimensions = array<i32: 1>} : vector<1x128xi32>
    %c0_6 = arith.constant 0 : index
    %c0_7 = arith.constant 0 : index
    %10 = vector.load %arg5[%c0_6, %c0_7] : memref<8x1xi32, #tpu.memory_space<vmem>>, vector<8x1xi32>
    %c128_i32 = arith.constant 128 : i32
    %11 = arith.muli %arg1, %c128_i32 : i32
    %12 = vector.broadcast %11 : i32 to vector<8x1xi32>
    %13 = arith.subi %10, %12 : vector<8x1xi32>
    %14 = vector.broadcast %13 : vector<8x1xi32> to vector<8x128xi32>
    %15 = vector.broadcast %9 : vector<1x128xi32> to vector<8x128xi32>
    %16 = arith.cmpi eq, %14, %15 : vector<8x128xi32>
    %cst_8 = arith.constant 4.000000e-01 : f32
    %17 = vector.broadcast %cst_8 : f32 to vector<8x128xf32>
    %18 = arith.subf %8, %17 : vector<8x128xf32>
    %19 = arith.select %16, %18, %8 : vector<8x128xi1>, vector<8x128xf32>
    %cst_9 = arith.constant dense<0xFF800000> : vector<8xf32>
    %20 = vector.multi_reduction <maximumf>, %19, %cst_9 [1] : vector<8x128xf32> to vector<8xf32>
    %21 = vector.shape_cast %20 : vector<8xf32> to vector<8x1xf32>
    %c0_10 = arith.constant 0 : index
    %c0_11 = arith.constant 0 : index
    %22 = vector.load %arg8[%c0_10, %c0_11] : memref<8x1xf32, #tpu.memory_space<vmem>>, vector<8x1xf32>
    %23 = arith.maximumf %22, %21 : vector<8x1xf32>
    %c0_12 = arith.constant 0 : index
    %c0_13 = arith.constant 0 : index
    %24 = vector.load %arg8[%c0_12, %c0_13] : memref<8x1xf32, #tpu.memory_space<vmem>>, vector<8x1xf32>
    %25 = arith.subf %24, %23 : vector<8x1xf32>
    %26 = math.exp %25 : vector<8x1xf32>
    %27 = vector.broadcast %23 : vector<8x1xf32> to vector<8x128xf32>
    %28 = arith.subf %19, %27 : vector<8x128xf32>
    %29 = math.exp %28 : vector<8x128xf32>
    %c0_14 = arith.constant 0 : index
    %c0_15 = arith.constant 0 : index
    %30 = vector.load %arg9[%c0_14, %c0_15] : memref<8x1xf32, #tpu.memory_space<vmem>>, vector<8x1xf32>
    %31 = arith.mulf %26, %30 : vector<8x1xf32>
    %cst_16 = arith.constant dense<0.000000e+00> : vector<8xf32>
    %32 = vector.multi_reduction <add>, %29, %cst_16 [1] : vector<8x128xf32> to vector<8xf32>
    %33 = vector.shape_cast %32 : vector<8xf32> to vector<8x1xf32>
    %34 = arith.addf %31, %33 : vector<8x1xf32>
    %c0_17 = arith.constant 0 : index
    %c0_18 = arith.constant 0 : index
    %35 = vector.load %arg9[%c0_17, %c0_18] : memref<8x1xf32, #tpu.memory_space<vmem>>, vector<8x1xf32>
    tpu.vector_store %arg9[%c0_17, %c0_18], %34 {strides = array<i32>} : memref<8x1xf32, #tpu.memory_space<vmem>>, vector<8x1xf32>,
    %c0_19 = arith.constant 0 : index
    %c0_20 = arith.constant 0 : index
    %36 = vector.load %arg8[%c0_19, %c0_20] : memref<8x1xf32, #tpu.memory_space<vmem>>, vector<8x1xf32>
    tpu.vector_store %arg8[%c0_19, %c0_20], %23 {strides = array<i32>} : memref<8x1xf32, #tpu.memory_space<vmem>>, vector<8x1xf32>,
    %c0_21 = arith.constant 0 : index
    %c0_22 = arith.constant 0 : index
    %37 = vector.load %arg10[%c0_21, %c0_22] : memref<8x1xf32, #tpu.memory_space<vmem>>, vector<8x1xf32>
    %cst_23 = arith.constant 0.000000e+00 : f32
    %38 = vector.broadcast %cst_23 : f32 to vector<8x128xf32>
    %39 = arith.select %16, %19, %38 : vector<8x128xi1>, vector<8x128xf32>
    %cst_24 = arith.constant dense<0.000000e+00> : vector<8xf32>
    %40 = vector.multi_reduction <add>, %39, %cst_24 [1] : vector<8x128xf32> to vector<8xf32>
    %41 = vector.shape_cast %40 : vector<8xf32> to vector<8x1xf32>
    %42 = arith.addf %37, %41 : vector<8x1xf32>
    %c0_25 = arith.constant 0 : index
    %c0_26 = arith.constant 0 : index
    %43 = vector.load %arg10[%c0_25, %c0_26] : memref<8x1xf32, #tpu.memory_space<vmem>>, vector<8x1xf32>
    tpu.vector_store %arg10[%c0_25, %c0_26], %42 {strides = array<i32>} : memref<8x1xf32, #tpu.memory_space<vmem>>, vector<8x1xf32>,
    %c1_i32 = arith.constant 1 : i32
    %44 = arith.cmpi eq, %arg1, %c1_i32 : i32
    %45 = arith.extui %44 : i1 to i32
    %c0_i32_27 = arith.constant 0 : i32
    %46 = arith.cmpi ne, %45, %c0_i32_27 : i32
    scf.if %46 {
      %47 = tpu.iota {dimensions = array<i32: 0>} : vector<8x1xi32>
      %c8_i32 = arith.constant 8 : i32
      %48 = arith.muli %arg0, %c8_i32 : i32
      %49 = vector.broadcast %48 : i32 to vector<8x1xi32>
      %50 = arith.addi %47, %49 : vector<8x1xi32>
      %c0_28 = arith.constant 0 : index
      %c0_29 = arith.constant 0 : index
      %51 = vector.load %arg8[%c0_28, %c0_29] : memref<8x1xf32, #tpu.memory_space<vmem>>, vector<8x1xf32>
      %c0_30 = arith.constant 0 : index
      %c0_31 = arith.constant 0 : index
      %52 = vector.load %arg9[%c0_30, %c0_31] : memref<8x1xf32, #tpu.memory_space<vmem>>, vector<8x1xf32>
      %53 = math.log %52 : vector<8x1xf32>
      %54 = arith.addf %51, %53 : vector<8x1xf32>
      %c0_32 = arith.constant 0 : index
      %c0_33 = arith.constant 0 : index
      %55 = vector.load %arg10[%c0_32, %c0_33] : memref<8x1xf32, #tpu.memory_space<vmem>>, vector<8x1xf32>
      %56 = arith.subf %54, %55 : vector<8x1xf32>
      %c12_i32 = arith.constant 12 : i32
      %57 = vector.broadcast %c12_i32 : i32 to vector<8x1xi32>
      %58 = arith.cmpi slt, %50, %57 : vector<8x1xi32>
      %cst_34 = arith.constant 0.000000e+00 : f32
      %59 = vector.broadcast %cst_34 : f32 to vector<8x1xf32>
      %60 = arith.select %58, %56, %59 : vector<8x1xi1>, vector<8x1xf32>
      %c0_35 = arith.constant 0 : index
      %c0_36 = arith.constant 0 : index
      %61 = vector.load %arg6[%c0_35, %c0_36] : memref<8x1xf32, #tpu.memory_space<vmem>>, vector<8x1xf32>
      tpu.vector_store %arg6[%c0_35, %c0_36], %60 {strides = array<i32>} : memref<8x1xf32, #tpu.memory_space<vmem>>, vector<8x1xf32>,
    } else {
    }
    return
  }
  func.func @transform_0(%arg0: i32, %arg1: i32) -> (i32, i32) {
    %c0_i32 = arith.constant 0 : i32
    %c0_i32_0 = arith.constant 0 : i32
    return %arg0, %c0_i32 : i32, i32
  }
  func.func @transform_1(%arg0: i32, %arg1: i32) -> (i32, i32) {
    %c0_i32 = arith.constant 0 : i32
    %c0_i32_0 = arith.constant 0 : i32
    return %c0_i32, %arg1 : i32, i32
  }
  func.func @transform_2(%arg0: i32, %arg1: i32) -> (i32, i32) {
    %c0_i32 = arith.constant 0 : i32
    %c0_i32_0 = arith.constant 0 : i32
    return %c0_i32, %arg1 : i32, i32
  }
  func.func @transform_3(%arg0: i32, %arg1: i32) -> (i32, i32) {
    %c0_i32 = arith.constant 0 : i32
    %c0_i32_0 = arith.constant 0 : i32
    return %arg0, %c0_i32 : i32, i32
  }
  func.func @transform_4(%arg0: i32, %arg1: i32) -> (i32, i32) {
    %c0_i32 = arith.constant 0 : i32
    %c0_i32_0 = arith.constant 0 : i32
    return %arg0, %c0_i32 : i32, i32
  }
}

</mosaic_0001>

<bundles_post_ra>
// kernel: tpu_custom_call.1
= control target key start
LH: loop header
LB: loop body
LE: loop exit
PB: predicated region body
PF: predicated region fallthrough
CT: control target
= control target key end

     0   :  { %9 = vsyncpa [#allocation7], 0  ;;  %s984_s0 = inlined_call_operand.vmem [shape: f32[16,32], index: 0, kind: input, shape index: {}]   ;;  %s985_s1 = inlined_call_operand.hbm [shape: bf16[32,256], index: 1, kind: input, shape index: {}]   ;;  %s986_s2 = inlined_call_operand.vmem [shape: f32[1,256], index: 2, kind: input, shape index: {}]   ;;  %s987_s3 = inlined_call_operand.vmem [shape: s32[16,1], index: 3, kind: input, shape index: {}]   ;;  %s988_s4 = inlined_call_operand.vmem [shape: f32[16,1], index: 4, kind: output, shape index: {}]  }
   0x1   :  { %11 = vsyncpa [#allocation7 + $0x1], 0  ;;  %s789_s15 = smov 0   ;;  %s791_s16 = smov 0  }
   0x2   :  { %s793_s17 = smov 0   ;;  %s795_s18 = smov 0  }
   0x3   :  { %s797_s19 = smov 0   ;;  %s799_s20 = smov 0  }
   0x4   :  { %s801_s21 = smov 0   ;;  %s803_s22 = smov 0  }
   0x5 LB: > { %s533_s23 = sadd.s32 4294967295, %s753_s22   ;;  %s26_s24 = sadd.s32 1, %s745_s20  ;;  %s753_s22 = sphi %s803_s22, %s17_s22   ;;  %s749_s21 = sphi %s801_s21, %s999_s21   ;;  %s745_s20 = sphi %s799_s20, %s998_s20   ;;  %s741_s19 = sphi %s797_s19, %s997_s19   ;;  %s737_s18 = sphi %s795_s18, %s996_s18   ;;  %s733_s17 = sphi %s793_s17, %s995_s17   ;;  %s729_s16 = sphi %s791_s16, %s994_s16   ;;  %s725_s15 = sphi %s789_s15, %s993_s15  }
   0x6   : > { %p27_p0 = scmp.ge.s32.totalorder %s26_s24, 2  ;;  %s29_s25 = sadd.s32 1, %s749_s21 }
   0x7   : > { %s62_s26 = sadd.s32 1, %s733_s17  ;;  %p69_p1 = scmp.ne.s32.totalorder %s733_s17, %s729_s16 }
   0x8   : > { %s1001_s24 = smov (%p27_p0, %s26_s24), 0  ;;  %s1003_s25 = smov (!%p27_p0, %s29_s25), %s749_s21 }
   0x9   : > { %s59_s27 = ssub.s32 %s745_s20, %s1001_s24  ;;  %p70_p2 = scmp.eq.s32.totalorder %s753_s22, 0 }
   0xa   : > { %p31_p3 = scmp.ge.s32.totalorder %s1003_s25, 2  ;;  %p60_p4 = scmp.eq.s32.totalorder %s59_s27, 0 }
   0xb   : > { %p839_p5 = por %p70_p2, %p69_p1  ;;  %p75_p6 = scmp.ne.s32.totalorder %s729_s16, %s725_s15 }
   0xc   : > { %s1005_s25 = smov (%p31_p3, %s1003_s25), 0  ;;  %p76_p7 = scmp.eq.s32.totalorder %s533_s23, 0 }
   0xd   : > { %s847_s29 = scalar_select %p60_p4, %s733_s17, %s62_s26  }
   0xe   : > { %p572_p8 = scmp.lt.s32.totalorder %s753_s22, 4  ;;  %s184_s30 = sand.u32 1, %s733_s17  }
   0xf   : > { %p851_p9 = por %p76_p7, %p75_p6  ;;  %s537_s6 = sshll.u32 %s184_s30, 4 }
  0x10   : > { %s538_s7 = sshll.u32 %s745_s20, 6  ;;  %s188_s11 = scalar_lea.vmem [#allocation6], %s537_s6 }
  0x11   : > { %s859_s10 = scalar_lea.hbm %s985_s1, %s538_s7  ;;  %s194_s12 = sshll.u32 %s188_s11, 4  ;;  %s867_s12 = int_to_ptr.vmem [resolvable:$true] %s194_s12 }
  0x12   : > { %p863_p10 = pnand %p572_p8, %p839_p5  ;;  %s870_s14 = scalar_lea.sflag [#allocation7], %s184_s30 }
  0x13   : > { %s657_s15 = scalar_lea.hbm %s859_s10, 256  ;;  %s662_s27 = scalar_lea.hbm %s985_s1, 512 }
  0x14   : > { %p658_p12 = scmp.ne.s32.totalorder %s859_s10, %s657_s15  ;;  %p659_p13 = pneg %p863_p10 }
  0x15   : > { %p663_p2 = scmp.lt.u32.totalorder %s859_s10, %s985_s1  ;;  %p664_p3 = scmp.lt.u32.totalorder %s662_s27, %s657_s15 }
  0x16   : > { %p660_p0 = pnand %p659_p13, %p658_p12  ;;  %p666_p5 = scmp.lt.u32.totalorder %s657_s15, %s859_s10 }
  0x17   : > { %p665_p4 = por %p664_p3, %p663_p2 }
  0x18   : > { %p661_p1 = pneg %p660_p0 }
  0x19   : > { %p667_p6 = por %p666_p5, %p665_p4 }
  0x1b   : > { %p668_p7 = pnand %p667_p6, %p661_p1 }
  0x1d   : > { %671 = shalt.err (!%p668_p7)
}
  0x1e   : > { %s672_s30 = scalar_lea.vmem %s867_s12, 256  ;;  %s755_s7 = smov [#allocation6]  }
  0x1f   : > { %p673_p8 = scmp.ne.s32.totalorder %s867_s12, %s672_s30  ;;  %s677_s8 = sshll.u32 %s755_s7, 4  ;;  %s678_s8 = int_to_ptr.vmem [resolvable:$false] %s677_s8 }
  0x20   : > { %s679_s9 = scalar_lea.vmem %s678_s8, 512  ;;  %p680_p11 = scmp.lt.s32.totalorder %s867_s12, %s678_s8 }
  0x21   : > { %p675_p12 = pnand %p673_p8, %p659_p13  ;;  %p681_p2 = scmp.lt.s32.totalorder %s679_s9, %s672_s30 }
  0x23   : > { %p676_p0 = pneg %p675_p12  ;;  %p682_p3 = por %p681_p2, %p680_p11 }
  0x25   : > { %p683_p4 = pnand %p682_p3, %p676_p0 }
  0x27   : > { %686 = shalt.err (!%p683_p4)
}
  0x28   : > { %s756_s11 = smov 128   ;;  %s757_s15 = smov 64  }
  0x29   : > { %s758_s23 = smov 4   ;;  %p215_p13 = scmp.lt.s32.totalorder %s753_s22, 5 }
  0x2a   : > { %571 = dma.hbm_to_vmem [thread:$0]  (!%p863_p10), %s859_s10, 256, %s867_s12, %s870_s14, %s756_s11, %s757_s15, %s758_s23  }
  0x2b   : > { %p992_p1 = scmp.ge.s32.totalorder %s753_s22, 1 }
  0x2d   : > { %p216_p5 = pnand %p992_p1, %p215_p13 }
  0x2e   : > { %s221_s26 = sand.u32 (!%p216_p5), 1, %s729_s16  }
  0x2f   : > { %219 = sbr.rel (%p216_p5) target bundleno = 909 (0x38d), region = 36  ;;  %s902_s27 = sshll.u32 (!%p216_p5), %s221_s26, 4 }
  0x30   : > { %s222_s28 = scalar_lea.sflag (!%p216_p5), [#allocation7], %s221_s26  ;;  %s225_s6 = scalar_lea.vmem (!%p216_p5), [#allocation6], %s902_s27 }
  0x36   : > { %720 = dma.done.wait (%p851_p9), %s222_s28, 256  }
  0x37   : > { %722 = vsyncadd (%p851_p9), %s222_s28, 4294967040  ;;  %p260_p10 = scmp.lt.s32.totalorder %s741_s19, 1  ;;  %p264_p11 = scmp.lt.s32.totalorder %s737_s18, 1 }
  0x38   : > { %p544_p9 = scmp.ne.s32.totalorder %s737_s18, 0 }
  0x39   : > { %s261_s10 = scalar_select %p260_p10, %s741_s19, 1 }
  0x3a   : > { %s913_s12 = scalar_select %p264_p11, %s737_s18, 1 }
  0x3b   : > { %s915_s13 = sshll.u32 %s261_s10, 3  ;;  %279 = sbr.rel (%p544_p9) target bundleno = 225 (0xe1), region = 44  ;;  %vm282_vm0 = vcmask (!%p544_p9), 261120   ;;  %vm292_vm1 = vcmask (!%p544_p9), 7168   ;;  %v759_v3 = vmov (!%p544_p9), -1e+30  }
  0x3c   : > { %s263_s5 = scalar_lea.vmem %s984_s0, %s915_s13  ;;  %s266_s9 = scalar_lea.vmem %s986_s2, %s913_s12  ;;  %293 = vst.msk [vmem:[#allocation3] sm:$0xff] (!%p544_p9), %vm292_vm1, %v759_v3  ;;  %v760_v4 = vmov (!%p544_p9), 0.0   ;;  %vm290_vm2 = vcmask (!%p544_p9), 257024  }
  0x3d   : > { %s270_s23 = scalar_lea.vmem %s987_s3, %s915_s13  ;;  %s274_s10 = scalar_lea.vmem %s988_s4, %s915_s13  ;;  %v280_v0 = vld [vmem:[%s263_s5] sm:$0xff] (!%p544_p9)  ;;  %294 = vst.msk [vmem:[#allocation4] sm:$0xff] (!%p544_p9), %vm292_vm1, %v760_v4  ;;  %295 = vst.msk [vmem:[#allocation5] sm:$0xff] (!%p544_p9), %vm292_vm1, %v760_v4 }
  0x3e   : > { %v281_v1 = vmul.f32 (!%p544_p9), %v280_v0, %v280_v0 }
  0x40   : > { %v283_v2 = vsel (!%p544_p9), %vm282_vm0, %v281_v1, 0.0 }
  0x41   : > { %284 = vadd.xlane.f32.xlu0 (!%p544_p9), %v283_v2 }
  0xce   : > { %v285_v5 = vpop.xlane.xlu0 %284 }
  0xcf   : > { %v286_v6 = vmax.f32 %v285_v5, 1e-24 }
  0xd1   : > { %645 = vrsqrt.f32 %v286_v6 }
  0xdb   : > { %v646_v7 = vpop.eup %645 }
  0xdc   : > { %v288_v8 = vmul.f32 %v646_v7, %v280_v0 }
  0xde   : > { %v289_v9 = vpack.c.bf16 %v288_v8, %v288_v8 }
  0xe0   : > { %291 = vst.msk [vmem:[#allocation2] sm:$0xf] %vm290_vm2, %v289_v9 }
  0xe1 PF: > { %v649_v10 = vld [vmem:[%s225_s6] sm:$0xff]   ;;  %v761_v11 = vmov 0.0   ;;  %v650_v12 = vld [vmem:[%s225_s6 + $0x8] sm:$0xff]   ;;  %vm762_vm3 = vmmov 0   ;;  %s549_s5 = sshll.u32 %s737_s18, 7  ;;  %v763_v14 = vmov 0   ;;  %v364_v18 = vlaneseq }
  0xe2   : > { %558 = vmatprep.subr.bf16.mxu0 %v761_v11  ;;  %562 = vmatprep.mubr.msk.bf16.mxu0 %vm762_vm3, %v761_v11  ;;  %v366_v13 = vld [vmem:[%s270_s23] sm:$0xff]  ;;  %v368_v15 = vstv %s549_s5  ;;  %vm320_vm4 = vcmask 261120   ;;  %vm396_vm6 = vcmask 7168   ;;  %p551_p6 = scmp.ne.s32.totalorder %s737_s18, 1 }
  0xe3   : > { %559 = vmatpush3.bf16.msra.mxu0 %v649_v10  ;;  %647 = vset.pattern.permute.xlu0 %v763_v14  ;;  %v369_v16 = vsub.s32 %v366_v13, %v368_v15  ;;  %v545_v19 = vld [vmem:[%s266_s9] ss:$0 sm:$0xff]  ;;  %v365_v20 = vand.u32 127, %v364_v18  ;;  %v378_v30 = vld [vmem:[#allocation3] sm:$0xff]  ;;  %v399_v33 = vld [vmem:[#allocation5] sm:$0xff]  ;;  %s552_s12 = sshll.u32 (!%p551_p6), %s741_s19, 3 }
  0xe4   : > { %560 = vmatprep.subr.bf16.mxu0 %v761_v11  ;;  %648 = vset.pattern.permute.xlu1 %v763_v14  ;;  %v391_v43 = vld [vmem:[#allocation4] sm:$0xff]  ;;  %v410_v48 = vshrl.u32 (!%p551_p6), %v364_v18, 7  ;;  %v412_v49 = vstv (!%p551_p6), %s552_s12 }
  0xe5   : > { %371 = vperm.xlu0 %647, %v369_v16  }
  0xe6   : > { %v413_v51 = vadd.s32 (!%p551_p6), %v412_v49, %v410_v48 }
  0xe7   : > { %561 = vmatpush3.bf16.msra.mxu0 %v650_v12  ;;  %v296_v17 = vld [vmem:[#allocation2] sm:$0xf] }
  0xe8   : > { %vm421_vm7 = vcmp.lt.s32.totalorder (!%p551_p6), %v413_v51, 12 }
  0xea   : > { %563 = vmatmul.mubr.msk.bf16.vlgmr.msra.gmra.mrb[0].mxu0 %vm320_vm4, %v296_v17 }
 0x164   : > { %v372_v21 = vpop.permute.xlu0 %371 }
 0x165   : > { %vm373_vm5 = vcmp.eq.s32.totalorder %v372_v21, %v365_v20 }
 0x1bd   : > { %v358_v22 = vpop.f32.mrb[0].mxu0 }
 0x1be   : > { %v359_v23 = vadd.f32 %v545_v19, %v358_v22  ;;  %v564_v24 = vpop.f32.mrb[1].mxu0 }
 0x1bf   : > { %v361_v25 = vpop.f32.mrb[2].mxu0 }
 0x1c0   : > { %v550_v26 = vadd.f32 -0.4, %v359_v23  ;;  %v565_v27 = vpop.f32.mrb[3].mxu0 }
 0x1c2   : > { %v375_v28 = vsel %vm373_vm5, %v550_v26, %v359_v23  ;;  %v400_v29 = vsel %vm373_vm5, %v550_v26, 0.0 }
 0x1c3   : > { %376 = vmax.xlane.f32.xlu0 %v375_v28 }
 0x1c7   : > { %401 = vadd.xlane.f32.xlu0 %v400_v29 }
 0x250   : > { %v377_v31 = vpop.xlane.xlu0 %376 }
 0x251   : > { %v379_v32 = vmax.f32 %v378_v30, %v377_v31 }
 0x253   : > { %v380_v34 = vsub.f32 %v378_v30, %v379_v32  ;;  %398 = vst.msk [vmem:[#allocation3] sm:$0xff] %vm396_vm6, %v379_v32  ;;  %385 = vperm.xlu1 %648, %v379_v32  }
 0x254   : > { %v402_v35 = vpop.xlane.xlu0 %401 }
 0x255   : > { %v403_v36 = vadd.f32 %v402_v35, %v399_v33  ;;  %v381_v41 = vmul.f32 1.442695, %v380_v34 }
 0x257   : > { %404 = vst.msk [vmem:[#allocation5] sm:$0xff] %vm396_vm6, %v403_v36 }
 0x25a   : > { %v414_v52 = vld [vmem:[#allocation3] sm:$0xff] (!%p551_p6) }
 0x25e   : > { %v419_v54 = vld [vmem:[#allocation5] sm:$0xff] (!%p551_p6) }
 0x2d2   : > { %v386_v37 = vpop.permute.xlu1 %385 }
 0x2d3   : > { %v388_v38 = vsub.f32 %v375_v28, %v386_v37 }
 0x2d5   : > { %v389_v39 = vmul.f32 1.442695, %v388_v38 }
 0x2d7   : > { %651 = vpow2.f32 %v389_v39 }
 0x2d8   : > { %653 = vpow2.f32 %v381_v41 }
 0x2e1   : > { %v652_v40 = vpop.eup %651 }
 0x2e2   : > { %393 = vadd.xlane.f32.xlu1 %v652_v40  ;;  %v654_v42 = vpop.eup %653 }
 0x2e3   : > { %v392_v44 = vmul.f32 %v654_v42, %v391_v43 }
 0x36c   : > { %408 = sbr.rel (%p551_p6) target bundleno = 909 (0x38d), region = 48 }
 0x36f   : > { %v394_v45 = vpop.xlane.xlu1 %393 }
 0x370   : > { %v395_v46 = vadd.f32 %v394_v45, %v392_v44 }
 0x372   : > { %397 = vst.msk [vmem:[#allocation4] sm:$0xff] %vm396_vm6, %v395_v46 }
 0x379   : > { %v415_v47 = vld [vmem:[#allocation4] sm:$0xff] }
 0x37a   : > { %655 = vlog2.f32 %v415_v47 }
 0x384   : > { %v656_v50 = vpop.eup %655 }
 0x385   : > { %v417_v53 = vmul.f32 0.6931472, %v656_v50 }
 0x387   : > { %v418_v55 = vadd.f32 %v417_v53, %v414_v52 }
 0x389   : > { %v420_v56 = vsub.f32 %v418_v55, %v419_v54 }
 0x38b   : > { %v422_v57 = vsel %vm421_vm7, %v420_v56, 0.0 }
 0x38c   : > { %423 = vst.msk [vmem:[%s274_s10] sm:$0xff] %vm396_vm6, %v422_v57 }
 0x38d PF: > { %s17_s22 = sadd.s32 1, %s753_s22   ;;  %s993_s15 = smov %s729_s16 }
 0x38e   : > { %p14_p7 = scmp.ge.s32.totalorder %s17_s22, 6   ;;  %s994_s16 = smov %s733_s17 }
 0x38f   : > { %s995_s17 = smov %s847_s29  ;;  %s996_s18 = smov %s745_s20 }
 0x390   : > { %s997_s19 = smov %s749_s21  ;;  %s998_s20 = smov %s1001_s24 }
 0x391   : > { %s999_s21 = smov %s1005_s25  ;;  %16 = sbr.rel (!%p14_p7) target bundleno = 5 (0x5), region = 93 }
 0x398   :  { %443 = vsyncpa [#allocation7], 1 }
 0x399   :  { %445 = vsyncpa [#allocation7 + $0x1], 1 }

</bundles_post_ra>
